<compile_context>
chip_gen: v5e
topology: v5e:2x2
jax: 0.10.0
libtpu: 0.0.40
codegen_flags: <defaults>
</compile_context>

<pallas_src>
import functools
import math

import jax
import jax.numpy as jnp
from jax.experimental import pallas as pl
from jax.experimental.pallas import tpu as pltpu


def _round_up(x, m):
    return (x + m - 1) // m * m


def make_mapping_kernel(num_layers, z_dim, fused_gains, out_width, feat_width,
                        alpha=0.2, eps=1e-8):
    """Build the fused mapping-net kernel; scalar constants folded via closure.

    fused_gains[l] = lr_multiplier / sqrt(fan_in_l) * sqrt(2)   (lrelu def_gain
    folded in; biases are pre-scaled by lr_multiplier * sqrt(2) in prepare).
    """
    inv_zdim = 1.0 / float(z_dim)
    alpha = float(alpha)
    fused_gains = tuple(float(g) for g in fused_gains)

    def kernel(z_ref, w_ref, b_ref, o_ref):
        # normalize_2nd_moment over the true z_dim (padded lanes are zero, so
        # summing the padded row and dividing by the true z_dim is exact).
        zf = z_ref[...].astype(jnp.float32)
        ssq = jnp.sum(zf * zf, axis=-1, keepdims=True) * inv_zdim
        h = zf * jax.lax.rsqrt(ssq + eps)

        # Unrolled layer loop: weights resident in VMEM, activation `h` is a
        # register-carried (TM, F) f32 value.  bf16 operands feed the MXU.
        for l in range(num_layers):
            acc = jnp.dot(h.astype(jnp.bfloat16), w_ref[l],
                          preferred_element_type=jnp.float32)
            # bias_act(act='lrelu'): leaky_relu(alpha) * sqrt(2); the sqrt(2)
            # gain is already folded into fused_gains / the prepared bias.
            t = acc * fused_gains[l] + b_ref[l]
            h = jnp.maximum(t, alpha * t)          # leaky ReLU (alpha in (0,1))

        h_out = h if out_width == feat_width else h[:, :out_width]
        o_ref[...] = h_out.astype(o_ref.dtype)

    return kernel


def prepare_mapping_params(weights, biases, lr_multiplier,
                           act_gain=math.sqrt(2.0), feat_align=128):
    """One-time (per-model) parameter packing, outside the per-call path.

    (out,in) weights -> zero-padded, transposed (in,out), stacked (L,F,F) bf16;
    biases -> (L,1,F) f32 pre-scaled by bias_gain*act_gain; per-layer fused
    gains = lr_multiplier / sqrt(fan_in) * act_gain.
    """
    max_feat = max(max(int(w.shape[0]), int(w.shape[1])) for w in weights)
    F = _round_up(max_feat, feat_align)

    w_stack, b_stack, gains = [], [], []
    for w, b in zip(weights, biases):
        out_f, in_f = int(w.shape[0]), int(w.shape[1])
        gains.append(float(lr_multiplier) * float(act_gain) / math.sqrt(in_f))
        wt = jnp.zeros((F, F), jnp.float32).at[:in_f, :out_f].set(
            jnp.asarray(w, jnp.float32).T)
        w_stack.append(wt.astype(jnp.bfloat16))
        bp = jnp.zeros((F,), jnp.float32).at[:out_f].set(
            jnp.asarray(b, jnp.float32) * float(lr_multiplier) * float(act_gain))
        b_stack.append(bp.reshape(1, F))
    return jnp.stack(w_stack), jnp.stack(b_stack), tuple(gains), F


def mapping_net_pallas(z, w_stack, b_stack, weight_gains, *,
                       z_dim, w_dim, num_ws, block_m=128):
    """z: (B, z_dim) float -> (B, num_ws, w_dim) float32 (c_dim == 0 path)."""
    # TODO(synk): c_dim > 0 (conditional embed + concat) branch not implemented.
    B = z.shape[0]
    L, F, _ = w_stack.shape
    Fw = _round_up(w_dim, 128)                       # lane-dense output width
    tm = _round_up(min(block_m, _round_up(B, 8)), 8)
    m_pad = _round_up(B, tm)

    # Pad batch / lanes only when needed (typical z_dim=512 is already 128-mult).
    if m_pad != B or z_dim != F:
        z_in = jnp.zeros((m_pad, F), jnp.float32).at[:B, :z_dim].set(
            z.astype(jnp.float32))
    else:
        z_in = z.astype(jnp.float32)

    kernel = make_mapping_kernel(L, z_dim, weight_gains, Fw, F)

    out = pl.pallas_call(
        kernel,
        out_shape=jax.ShapeDtypeStruct((m_pad, Fw), jnp.float32),
        grid_spec=pltpu.PrefetchScalarGridSpec(
            num_scalar_prefetch=0,
            grid=(m_pad // tm,),
            in_specs=[
                pl.BlockSpec((tm, F), lambda i: (i, 0)),       # z tile (pipelined)
                pl.BlockSpec((L, F, F), lambda i: (0, 0, 0)),  # weights, resident
                pl.BlockSpec((L, 1, F), lambda i: (0, 0, 0)),  # biases,  resident
            ],
            out_specs=pl.BlockSpec((tm, Fw), lambda i: (i, 0)),
        ),
        compiler_params=pltpu.CompilerParams(
            dimension_semantics=("parallel",)),                # megacore on v7x
    )(z_in, w_stack, b_stack)

    w = out[:B, :w_dim]
    if num_ws is not None:
        w = jnp.broadcast_to(w[:, None, :], (B, num_ws, w_dim))
    # TODO(synk): training-time w_avg EMA update and truncation (psi != 1) are
    # tiny wrapper-level ops on (B, w_dim); not part of the kernel (eval path).
    return w


def mapping_net_reference(z, weights, biases, lr_multiplier, num_ws):
    """Pure-JAX f32 reference mirroring the PyTorch MappingNet forward."""
    x = z.astype(jnp.float32)
    x = x * jax.lax.rsqrt(jnp.mean(x * x, axis=1, keepdims=True) + 1e-8)
    for w, b in zip(weights, biases):
        in_f = w.shape[1]
        wg = lr_multiplier / math.sqrt(in_f)
        h = x @ (w * wg).T + b * lr_multiplier
        x = jnp.where(h >= 0.0, h, 0.2 * h) * math.sqrt(2.0)
    if num_ws is not None:
        x = jnp.repeat(x[:, None, :], num_ws, axis=1)
    return x


if __name__ == "__main__":
    # Small MappingNet config (c_dim=0): z_dim=w_dim=layer_features=32,
    # num_layers=8, num_ws=4, lr_multiplier=0.01 (as in the PyTorch module).
    z_dim = w_dim = 32
    num_layers = 8
    num_ws = 4
    lr_multiplier = 0.01
    batch = 64

    key = jax.random.PRNGKey(0)
    keys = jax.random.split(key, num_layers + 1)

    z = jax.random.normal(keys[0], (batch, z_dim), dtype=jnp.float32)

    # FullyConnectedLayer init: weight = randn([out, in]) / lr_multiplier,
    # bias = zeros (bias_init=0).  features_list = [z_dim] + [w_dim] * 8.
    features = [z_dim] + [w_dim] * num_layers
    weights, biases = [], []
    for l in range(num_layers):
        in_f, out_f = features[l], features[l + 1]
        weights.append(
            jax.random.normal(keys[l + 1], (out_f, in_f), jnp.float32)
            / lr_multiplier)
        biases.append(jnp.zeros((out_f,), jnp.float32))

    w_stack, b_stack, gains, _ = prepare_mapping_params(
        weights, biases, lr_multiplier)

    # jit the wrapper so pad / slice / broadcast fuse around the pallas_call.
    fwd = jax.jit(functools.partial(
        mapping_net_pallas, weight_gains=gains,
        z_dim=z_dim, w_dim=w_dim, num_ws=num_ws,
        block_m=32))  # small tile so the test exercises a multi-step grid

    out = fwd(z, w_stack, b_stack)
    out = jax.block_until_ready(out)

    ref = mapping_net_reference(z, weights, biases, lr_multiplier, num_ws)
    assert out.shape == (batch, num_ws, w_dim)
    # bf16 MXU operands (f32 accumulation) across 8 fused layers -> loose tol.
    max_err = float(jnp.max(jnp.abs(out - ref)))
    scale = float(jnp.max(jnp.abs(ref)))
    assert max_err <= 5e-2 * scale + 1e-3, (max_err, scale)

    print("KERNEL_OK")
</pallas_src>

<mosaic_0001>
module attributes {stable_mosaic.version = 11 : i64} {
  func.func @kernel(%arg0: i32, %arg1: memref<32x128xf32, #tpu.memory_space<vmem>>, %arg2: memref<8x128x128xbf16, #tpu.memory_space<vmem>>, %arg3: memref<8x1x128xf32, #tpu.memory_space<vmem>>, %arg4: memref<32x128xf32, #tpu.memory_space<vmem>>) attributes {dimension_semantics = [#tpu.dimension_semantics<parallel>], iteration_bounds = array<i64: 2>, scalar_prefetch = 0 : i64, scratch_operands = 0 : i64, tpu.core_type = #tpu.core_type<tc>, window_params = [{transform_indices = @transform_0, window_bounds = array<i64: 32, 128>}, {pipeline_mode = #tpu.pipeline_mode<synchronous>, transform_indices = @transform_1, window_bounds = array<i64: 8, 128, 128>}, {pipeline_mode = #tpu.pipeline_mode<synchronous>, transform_indices = @transform_2, window_bounds = array<i64: 8, 1, 128>}, {transform_indices = @transform_3, window_bounds = array<i64: 32, 128>}]} {
    %c0 = arith.constant 0 : index
    %c0_0 = arith.constant 0 : index
    %0 = vector.load %arg1[%c0, %c0_0] : memref<32x128xf32, #tpu.memory_space<vmem>>, vector<32x128xf32>
    %1 = arith.mulf %0, %0 : vector<32x128xf32>
    %cst = arith.constant dense<0.000000e+00> : vector<32xf32>
    %2 = vector.multi_reduction <add>, %1, %cst [1] : vector<32x128xf32> to vector<32xf32>
    %3 = vector.shape_cast %2 : vector<32xf32> to vector<32x1xf32>
    %cst_1 = arith.constant 3.125000e-02 : f32
    %4 = vector.broadcast %cst_1 : f32 to vector<32x1xf32>
    %5 = arith.mulf %3, %4 : vector<32x1xf32>
    %cst_2 = arith.constant 9.99999993E-9 : f32
    %6 = vector.broadcast %cst_2 : f32 to vector<32x1xf32>
    %7 = arith.addf %5, %6 : vector<32x1xf32>
    %8 = math.rsqrt %7 : vector<32x1xf32>
    %9 = vector.broadcast %8 : vector<32x1xf32> to vector<32x128xf32>
    %10 = arith.mulf %0, %9 : vector<32x128xf32>
    %11 = arith.truncf %10 : vector<32x128xf32> to vector<32x128xbf16>
    %c0_3 = arith.constant 0 : index
    %c0_4 = arith.constant 0 : index
    %c0_5 = arith.constant 0 : index
    %12 = vector.load %arg2[%c0_3, %c0_4, %c0_5] : memref<8x128x128xbf16, #tpu.memory_space<vmem>>, vector<1x128x128xbf16>
    %13 = vector.shape_cast %12 : vector<1x128x128xbf16> to vector<128x128xbf16>
    %cst_6 = arith.constant dense<0.000000e+00> : vector<32x128xf32>
    %14 = tpu.matmul %11, %13, %cst_6 {dimension_numbers = #tpu.dot_dimension_numbers<[1], [0], [0], [1], [0, 0, 1, 1], [], []>} : vector<32x128xbf16>, vector<128x128xbf16>, vector<32x128xf32> -> vector<32x128xf32>
    %cst_7 = arith.constant 2.500000e-03 : f32
    %15 = vector.broadcast %cst_7 : f32 to vector<32x128xf32>
    %16 = arith.mulf %14, %15 : vector<32x128xf32>
    %c0_8 = arith.constant 0 : index
    %c0_9 = arith.constant 0 : index
    %c0_10 = arith.constant 0 : index
    %17 = vector.load %arg3[%c0_8, %c0_9, %c0_10] : memref<8x1x128xf32, #tpu.memory_space<vmem>>, vector<1x1x128xf32>
    %18 = vector.shape_cast %17 : vector<1x1x128xf32> to vector<1x128xf32>
    %19 = vector.broadcast %18 : vector<1x128xf32> to vector<32x128xf32>
    %20 = arith.addf %16, %19 : vector<32x128xf32>
    %cst_11 = arith.constant 2.000000e-01 : f32
    %21 = vector.broadcast %cst_11 : f32 to vector<32x128xf32>
    %22 = arith.mulf %21, %20 : vector<32x128xf32>
    %23 = arith.maximumf %20, %22 : vector<32x128xf32>
    %24 = arith.truncf %23 : vector<32x128xf32> to vector<32x128xbf16>
    %c1 = arith.constant 1 : index
    %c0_12 = arith.constant 0 : index
    %c0_13 = arith.constant 0 : index
    %25 = vector.load %arg2[%c1, %c0_12, %c0_13] : memref<8x128x128xbf16, #tpu.memory_space<vmem>>, vector<1x128x128xbf16>
    %26 = vector.shape_cast %25 : vector<1x128x128xbf16> to vector<128x128xbf16>
    %cst_14 = arith.constant dense<0.000000e+00> : vector<32x128xf32>
    %27 = tpu.matmul %24, %26, %cst_14 {dimension_numbers = #tpu.dot_dimension_numbers<[1], [0], [0], [1], [0, 0, 1, 1], [], []>} : vector<32x128xbf16>, vector<128x128xbf16>, vector<32x128xf32> -> vector<32x128xf32>
    %cst_15 = arith.constant 2.500000e-03 : f32
    %28 = vector.broadcast %cst_15 : f32 to vector<32x128xf32>
    %29 = arith.mulf %27, %28 : vector<32x128xf32>
    %c1_16 = arith.constant 1 : index
    %c0_17 = arith.constant 0 : index
    %c0_18 = arith.constant 0 : index
    %30 = vector.load %arg3[%c1_16, %c0_17, %c0_18] : memref<8x1x128xf32, #tpu.memory_space<vmem>>, vector<1x1x128xf32>
    %31 = vector.shape_cast %30 : vector<1x1x128xf32> to vector<1x128xf32>
    %32 = vector.broadcast %31 : vector<1x128xf32> to vector<32x128xf32>
    %33 = arith.addf %29, %32 : vector<32x128xf32>
    %cst_19 = arith.constant 2.000000e-01 : f32
    %34 = vector.broadcast %cst_19 : f32 to vector<32x128xf32>
    %35 = arith.mulf %34, %33 : vector<32x128xf32>
    %36 = arith.maximumf %33, %35 : vector<32x128xf32>
    %37 = arith.truncf %36 : vector<32x128xf32> to vector<32x128xbf16>
    %c2 = arith.constant 2 : index
    %c0_20 = arith.constant 0 : index
    %c0_21 = arith.constant 0 : index
    %38 = vector.load %arg2[%c2, %c0_20, %c0_21] : memref<8x128x128xbf16, #tpu.memory_space<vmem>>, vector<1x128x128xbf16>
    %39 = vector.shape_cast %38 : vector<1x128x128xbf16> to vector<128x128xbf16>
    %cst_22 = arith.constant dense<0.000000e+00> : vector<32x128xf32>
    %40 = tpu.matmul %37, %39, %cst_22 {dimension_numbers = #tpu.dot_dimension_numbers<[1], [0], [0], [1], [0, 0, 1, 1], [], []>} : vector<32x128xbf16>, vector<128x128xbf16>, vector<32x128xf32> -> vector<32x128xf32>
    %cst_23 = arith.constant 2.500000e-03 : f32
    %41 = vector.broadcast %cst_23 : f32 to vector<32x128xf32>
    %42 = arith.mulf %40, %41 : vector<32x128xf32>
    %c2_24 = arith.constant 2 : index
    %c0_25 = arith.constant 0 : index
    %c0_26 = arith.constant 0 : index
    %43 = vector.load %arg3[%c2_24, %c0_25, %c0_26] : memref<8x1x128xf32, #tpu.memory_space<vmem>>, vector<1x1x128xf32>
    %44 = vector.shape_cast %43 : vector<1x1x128xf32> to vector<1x128xf32>
    %45 = vector.broadcast %44 : vector<1x128xf32> to vector<32x128xf32>
    %46 = arith.addf %42, %45 : vector<32x128xf32>
    %cst_27 = arith.constant 2.000000e-01 : f32
    %47 = vector.broadcast %cst_27 : f32 to vector<32x128xf32>
    %48 = arith.mulf %47, %46 : vector<32x128xf32>
    %49 = arith.maximumf %46, %48 : vector<32x128xf32>
    %50 = arith.truncf %49 : vector<32x128xf32> to vector<32x128xbf16>
    %c3 = arith.constant 3 : index
    %c0_28 = arith.constant 0 : index
    %c0_29 = arith.constant 0 : index
    %51 = vector.load %arg2[%c3, %c0_28, %c0_29] : memref<8x128x128xbf16, #tpu.memory_space<vmem>>, vector<1x128x128xbf16>
    %52 = vector.shape_cast %51 : vector<1x128x128xbf16> to vector<128x128xbf16>
    %cst_30 = arith.constant dense<0.000000e+00> : vector<32x128xf32>
    %53 = tpu.matmul %50, %52, %cst_30 {dimension_numbers = #tpu.dot_dimension_numbers<[1], [0], [0], [1], [0, 0, 1, 1], [], []>} : vector<32x128xbf16>, vector<128x128xbf16>, vector<32x128xf32> -> vector<32x128xf32>
    %cst_31 = arith.constant 2.500000e-03 : f32
    %54 = vector.broadcast %cst_31 : f32 to vector<32x128xf32>
    %55 = arith.mulf %53, %54 : vector<32x128xf32>
    %c3_32 = arith.constant 3 : index
    %c0_33 = arith.constant 0 : index
    %c0_34 = arith.constant 0 : index
    %56 = vector.load %arg3[%c3_32, %c0_33, %c0_34] : memref<8x1x128xf32, #tpu.memory_space<vmem>>, vector<1x1x128xf32>
    %57 = vector.shape_cast %56 : vector<1x1x128xf32> to vector<1x128xf32>
    %58 = vector.broadcast %57 : vector<1x128xf32> to vector<32x128xf32>
    %59 = arith.addf %55, %58 : vector<32x128xf32>
    %cst_35 = arith.constant 2.000000e-01 : f32
    %60 = vector.broadcast %cst_35 : f32 to vector<32x128xf32>
    %61 = arith.mulf %60, %59 : vector<32x128xf32>
    %62 = arith.maximumf %59, %61 : vector<32x128xf32>
    %63 = arith.truncf %62 : vector<32x128xf32> to vector<32x128xbf16>
    %c4 = arith.constant 4 : index
    %c0_36 = arith.constant 0 : index
    %c0_37 = arith.constant 0 : index
    %64 = vector.load %arg2[%c4, %c0_36, %c0_37] : memref<8x128x128xbf16, #tpu.memory_space<vmem>>, vector<1x128x128xbf16>
    %65 = vector.shape_cast %64 : vector<1x128x128xbf16> to vector<128x128xbf16>
    %cst_38 = arith.constant dense<0.000000e+00> : vector<32x128xf32>
    %66 = tpu.matmul %63, %65, %cst_38 {dimension_numbers = #tpu.dot_dimension_numbers<[1], [0], [0], [1], [0, 0, 1, 1], [], []>} : vector<32x128xbf16>, vector<128x128xbf16>, vector<32x128xf32> -> vector<32x128xf32>
    %cst_39 = arith.constant 2.500000e-03 : f32
    %67 = vector.broadcast %cst_39 : f32 to vector<32x128xf32>
    %68 = arith.mulf %66, %67 : vector<32x128xf32>
    %c4_40 = arith.constant 4 : index
    %c0_41 = arith.constant 0 : index
    %c0_42 = arith.constant 0 : index
    %69 = vector.load %arg3[%c4_40, %c0_41, %c0_42] : memref<8x1x128xf32, #tpu.memory_space<vmem>>, vector<1x1x128xf32>
    %70 = vector.shape_cast %69 : vector<1x1x128xf32> to vector<1x128xf32>
    %71 = vector.broadcast %70 : vector<1x128xf32> to vector<32x128xf32>
    %72 = arith.addf %68, %71 : vector<32x128xf32>
    %cst_43 = arith.constant 2.000000e-01 : f32
    %73 = vector.broadcast %cst_43 : f32 to vector<32x128xf32>
    %74 = arith.mulf %73, %72 : vector<32x128xf32>
    %75 = arith.maximumf %72, %74 : vector<32x128xf32>
    %76 = arith.truncf %75 : vector<32x128xf32> to vector<32x128xbf16>
    %c5 = arith.constant 5 : index
    %c0_44 = arith.constant 0 : index
    %c0_45 = arith.constant 0 : index
    %77 = vector.load %arg2[%c5, %c0_44, %c0_45] : memref<8x128x128xbf16, #tpu.memory_space<vmem>>, vector<1x128x128xbf16>
    %78 = vector.shape_cast %77 : vector<1x128x128xbf16> to vector<128x128xbf16>
    %cst_46 = arith.constant dense<0.000000e+00> : vector<32x128xf32>
    %79 = tpu.matmul %76, %78, %cst_46 {dimension_numbers = #tpu.dot_dimension_numbers<[1], [0], [0], [1], [0, 0, 1, 1], [], []>} : vector<32x128xbf16>, vector<128x128xbf16>, vector<32x128xf32> -> vector<32x128xf32>
    %cst_47 = arith.constant 2.500000e-03 : f32
    %80 = vector.broadcast %cst_47 : f32 to vector<32x128xf32>
    %81 = arith.mulf %79, %80 : vector<32x128xf32>
    %c5_48 = arith.constant 5 : index
    %c0_49 = arith.constant 0 : index
    %c0_50 = arith.constant 0 : index
    %82 = vector.load %arg3[%c5_48, %c0_49, %c0_50] : memref<8x1x128xf32, #tpu.memory_space<vmem>>, vector<1x1x128xf32>
    %83 = vector.shape_cast %82 : vector<1x1x128xf32> to vector<1x128xf32>
    %84 = vector.broadcast %83 : vector<1x128xf32> to vector<32x128xf32>
    %85 = arith.addf %81, %84 : vector<32x128xf32>
    %cst_51 = arith.constant 2.000000e-01 : f32
    %86 = vector.broadcast %cst_51 : f32 to vector<32x128xf32>
    %87 = arith.mulf %86, %85 : vector<32x128xf32>
    %88 = arith.maximumf %85, %87 : vector<32x128xf32>
    %89 = arith.truncf %88 : vector<32x128xf32> to vector<32x128xbf16>
    %c6 = arith.constant 6 : index
    %c0_52 = arith.constant 0 : index
    %c0_53 = arith.constant 0 : index
    %90 = vector.load %arg2[%c6, %c0_52, %c0_53] : memref<8x128x128xbf16, #tpu.memory_space<vmem>>, vector<1x128x128xbf16>
    %91 = vector.shape_cast %90 : vector<1x128x128xbf16> to vector<128x128xbf16>
    %cst_54 = arith.constant dense<0.000000e+00> : vector<32x128xf32>
    %92 = tpu.matmul %89, %91, %cst_54 {dimension_numbers = #tpu.dot_dimension_numbers<[1], [0], [0], [1], [0, 0, 1, 1], [], []>} : vector<32x128xbf16>, vector<128x128xbf16>, vector<32x128xf32> -> vector<32x128xf32>
    %cst_55 = arith.constant 2.500000e-03 : f32
    %93 = vector.broadcast %cst_55 : f32 to vector<32x128xf32>
    %94 = arith.mulf %92, %93 : vector<32x128xf32>
    %c6_56 = arith.constant 6 : index
    %c0_57 = arith.constant 0 : index
    %c0_58 = arith.constant 0 : index
    %95 = vector.load %arg3[%c6_56, %c0_57, %c0_58] : memref<8x1x128xf32, #tpu.memory_space<vmem>>, vector<1x1x128xf32>
    %96 = vector.shape_cast %95 : vector<1x1x128xf32> to vector<1x128xf32>
    %97 = vector.broadcast %96 : vector<1x128xf32> to vector<32x128xf32>
    %98 = arith.addf %94, %97 : vector<32x128xf32>
    %cst_59 = arith.constant 2.000000e-01 : f32
    %99 = vector.broadcast %cst_59 : f32 to vector<32x128xf32>
    %100 = arith.mulf %99, %98 : vector<32x128xf32>
    %101 = arith.maximumf %98, %100 : vector<32x128xf32>
    %102 = arith.truncf %101 : vector<32x128xf32> to vector<32x128xbf16>
    %c7 = arith.constant 7 : index
    %c0_60 = arith.constant 0 : index
    %c0_61 = arith.constant 0 : index
    %103 = vector.load %arg2[%c7, %c0_60, %c0_61] : memref<8x128x128xbf16, #tpu.memory_space<vmem>>, vector<1x128x128xbf16>
    %104 = vector.shape_cast %103 : vector<1x128x128xbf16> to vector<128x128xbf16>
    %cst_62 = arith.constant dense<0.000000e+00> : vector<32x128xf32>
    %105 = tpu.matmul %102, %104, %cst_62 {dimension_numbers = #tpu.dot_dimension_numbers<[1], [0], [0], [1], [0, 0, 1, 1], [], []>} : vector<32x128xbf16>, vector<128x128xbf16>, vector<32x128xf32> -> vector<32x128xf32>
    %cst_63 = arith.constant 2.500000e-03 : f32
    %106 = vector.broadcast %cst_63 : f32 to vector<32x128xf32>
    %107 = arith.mulf %105, %106 : vector<32x128xf32>
    %c7_64 = arith.constant 7 : index
    %c0_65 = arith.constant 0 : index
    %c0_66 = arith.constant 0 : index
    %108 = vector.load %arg3[%c7_64, %c0_65, %c0_66] : memref<8x1x128xf32, #tpu.memory_space<vmem>>, vector<1x1x128xf32>
    %109 = vector.shape_cast %108 : vector<1x1x128xf32> to vector<1x128xf32>
    %110 = vector.broadcast %109 : vector<1x128xf32> to vector<32x128xf32>
    %111 = arith.addf %107, %110 : vector<32x128xf32>
    %cst_67 = arith.constant 2.000000e-01 : f32
    %112 = vector.broadcast %cst_67 : f32 to vector<32x128xf32>
    %113 = arith.mulf %112, %111 : vector<32x128xf32>
    %114 = arith.maximumf %111, %113 : vector<32x128xf32>
    %c0_68 = arith.constant 0 : index
    %c0_69 = arith.constant 0 : index
    %115 = vector.load %arg4[%c0_68, %c0_69] : memref<32x128xf32, #tpu.memory_space<vmem>>, vector<32x128xf32>
    tpu.vector_store %arg4[%c0_68, %c0_69], %114 {strides = array<i32>} : memref<32x128xf32, #tpu.memory_space<vmem>>, vector<32x128xf32>,
    return
  }
  func.func @transform_0(%arg0: i32) -> (i32, i32) {
    %c0_i32 = arith.constant 0 : i32
    %c0_i32_0 = arith.constant 0 : i32
    return %arg0, %c0_i32 : i32, i32
  }
  func.func @transform_1(%arg0: i32) -> (i32, i32, i32) {
    %c0_i32 = arith.constant 0 : i32
    %c0_i32_0 = arith.constant 0 : i32
    %c0_i32_1 = arith.constant 0 : i32
    %c0_i32_2 = arith.constant 0 : i32
    return %c0_i32, %c0_i32_0, %c0_i32_1 : i32, i32, i32
  }
  func.func @transform_2(%arg0: i32) -> (i32, i32, i32) {
    %c0_i32 = arith.constant 0 : i32
    %c0_i32_0 = arith.constant 0 : i32
    %c0_i32_1 = arith.constant 0 : i32
    %c0_i32_2 = arith.constant 0 : i32
    return %c0_i32, %c0_i32_0, %c0_i32_1 : i32, i32, i32
  }
  func.func @transform_3(%arg0: i32) -> (i32, i32) {
    %c0_i32 = arith.constant 0 : i32
    %c0_i32_0 = arith.constant 0 : i32
    return %arg0, %c0_i32 : i32, i32
  }
}

</mosaic_0001>

<bundles_post_ra>
// kernel: mapping_net_pallas.1
= control target key start
LH: loop header
LB: loop body
LE: loop exit
PB: predicated region body
PF: predicated region fallthrough
CT: control target
= control target key end

     0   :  { %8 = vsyncpa [#allocation3], 0  ;;  %s1627_s12 = smov 0   ;;  %s1698_s0 = inlined_call_operand.vmem [shape: f32[64,128], index: 0, kind: input, shape index: {}]   ;;  %s1699_s1 = inlined_call_operand.hbm [shape: bf16[8,128,128], index: 1, kind: input, shape index: {}]   ;;  %s1700_s2 = inlined_call_operand.vmem [shape: f32[8,1,128], index: 2, kind: input, shape index: {}]   ;;  %s1701_s3 = inlined_call_operand.vmem [shape: f32[64,128], index: 3, kind: output, shape index: {}]  }
   0x1 LB: > { %s124_s15 = sshll.u32 %s1699_s1, 4  ;;  %s1185_s16 = sadd.s32 4294967295, %s1602_s12   ;;  %s1602_s12 = sphi %s1627_s12, %s14_s12   ;;  %s125_s15 = int_to_ptr.hbm [resolvable:$true] %s124_s15 }
   0x2   : > { %p1187_p0 = scmp.ge.s32.totalorder %s1602_s12, 1  ;;  %p113_p1 = scmp.lt.s32.totalorder %s1602_s12, 3 }
   0x3   : > { %p1533_p2 = scmp.eq.s32.totalorder %s1185_s16, 0  ;;  %s1604_s17 = smov [#allocation2]  }
   0x4   : > { %p114_p3 = pnand %p1187_p0, %p113_p1  ;;  %s126_s18 = sshll.u32 %s1604_s17, 4  ;;  %s127_s18 = int_to_ptr.vmem [resolvable:$true] %s126_s18 }
   0x5   : > { %s1605_s19 = smov 64   ;;  %s1606_s20 = smov 4  }
   0x6   : > { %p1529_p4 = pneg %p114_p3  ;;  %154 = sbr.rel (%p114_p3) target bundleno = 1363 (0x553), region = 32 }
   0x8   : > { %p1530_p5 = pnand %p1533_p2, %p1529_p4 }
   0xa   : > { %1532 = dma.hbm_to_vmem [thread:$0]  (!%p1530_p5), %s125_s15, 8192, %s127_s18, [#allocation3], %s1605_s19, %s1605_s19, %s1606_s20  }
   0xb   : > { %1597 = dma.done.wait (%p1533_p2), [#allocation3], 8192  }
   0xc   : > { %1599 = vsyncadd (%p1533_p2), [#allocation3], 4294959104  ;;  %s1192_s21 = sshll.u32 %s1185_s16, 2  ;;  %v1468_v8 = vld [vmem:[#allocation2 + $0x38] sm:$0xff]  ;;  %v1467_v9 = vld [vmem:[#allocation2 + $0x30] sm:$0xff] }
   0xd   : > { %p180_p6 = scmp.lt.s32.totalorder %s1192_s21, 7  ;;  %325 = vmatpush.bf16.msra.mxu0 %v1468_v8  ;;  %v1466_v10 = vld [vmem:[#allocation2 + $0x28] sm:$0xff]  ;;  %v1465_v11 = vld [vmem:[#allocation2 + $0x20] sm:$0xff]  ;;  %v1464_v12 = vld [vmem:[#allocation2 + $0x18] sm:$0xff] }
   0xe   : > { %v1463_v13 = vld [vmem:[#allocation2 + $0x10] sm:$0xff]  ;;  %v1462_v14 = vld [vmem:[#allocation2 + $0x8] sm:$0xff]  ;;  %v1461_v15 = vld [vmem:[#allocation2] sm:$0xff] }
   0xf   : > { %s1703_s21 = smov (!%p180_p6, %s1192_s21), 7  ;;  %v1476_v34 = vld [vmem:[#allocation2 + $0x78] sm:$0xff]  ;;  %v1475_v38 = vld [vmem:[#allocation2 + $0x70] sm:$0xff]  ;;  %v1474_v44 = vld [vmem:[#allocation2 + $0x68] sm:$0xff] }
  0x10   : > { %s1193_s22 = sshll.u32 %s1703_s21, 3  ;;  %431 = vmatpush.bf16.msra.mxu1 %v1476_v34  ;;  %v1479_v34 = vld [vmem:[#allocation2 + $0x90] sm:$0xff] }
  0x11   : > { %s183_s25 = scalar_lea.vmem %s1698_s0, %s1193_s22  ;;  %326 = vmatpush.bf16.msra.mxu0 %v1467_v9  ;;  %s189_s18 = scalar_lea.vmem %s1701_s3, %s1193_s22 }
  0x12   : > { %v1646_v0 = vld [vmem:[%s183_s25 + $0x10] sm:$0xff]  ;;  %v1648_v1 = vld [vmem:[%s183_s25] sm:$0xff]  ;;  %v1654_v4 = vld [vmem:[%s183_s25 + $0x18] sm:$0xff] }
  0x13   : > { %v197_v2 = vmul.f32 %v1646_v0, %v1646_v0  ;;  %v195_v3 = vmul.f32 %v1648_v1, %v1648_v1  ;;  %v1656_v5 = vld [vmem:[%s183_s25 + $0x8] sm:$0xff]  ;;  %v198_v6 = vmul.f32 %v1654_v4, %v1654_v4 }
  0x14   : > { %v196_v7 = vmul.f32 %v1656_v5, %v1656_v5  ;;  %432 = vmatpush.bf16.msra.mxu1 %v1475_v38 }
  0x15   : > { %203 = vadd.xlane.f32.xlu1 %v197_v2  ;;  %199 = vadd.xlane.f32.xlu0 %v195_v3  ;;  %v1473_v2 = vld [vmem:[#allocation2 + $0x60] sm:$0xff]  ;;  %v1472_v3 = vld [vmem:[#allocation2 + $0x58] sm:$0xff] }
  0x16   : > { %327 = vmatpush.bf16.msra.mxu0 %v1466_v10  ;;  %v1484_v10 = vld [vmem:[#allocation2 + $0xb8] sm:$0xff] }
  0x17   : > { %538 = vmatpush.bf16.msra.mxu2 %v1484_v10 }
  0x18   : > { %433 = vmatpush.bf16.msra.mxu1 %v1474_v44 }
  0x1a   : > { %328 = vmatpush.bf16.msra.mxu0 %v1465_v11 }
  0x1c   : > { %434 = vmatpush.bf16.msra.mxu1 %v1473_v2  ;;  %v1487_v2 = vld [vmem:[#allocation2 + $0xd0] sm:$0xff] }
  0x1d   : > { %205 = vadd.xlane.f32.xlu1 %v198_v6  ;;  %201 = vadd.xlane.f32.xlu0 %v196_v7  ;;  %v1470_v6 = vld [vmem:[#allocation2 + $0x48] sm:$0xff]  ;;  %v1469_v7 = vld [vmem:[#allocation2 + $0x40] sm:$0xff] }
  0x1e   : > { %329 = vmatpush.bf16.msra.mxu0 %v1464_v12 }
  0x20   : > { %435 = vmatpush.bf16.msra.mxu1 %v1472_v3  ;;  %v1486_v3 = vld [vmem:[#allocation2 + $0xc8] sm:$0xff] }
  0x22   : > { %330 = vmatpush.bf16.msra.mxu0 %v1463_v13 }
  0x26   : > { %331 = vmatpush.bf16.msra.mxu0 %v1462_v14  ;;  %v1482_v14 = vld [vmem:[#allocation2 + $0xa8] sm:$0xff] }
  0x2a   : > { %332 = vmatpush.bf16.msra.mxu0 %v1461_v15 }
  0x88   : > { %v204_v16 = vpop.xlane.xlu1 %203  ;;  %v200_v17 = vpop.xlane.xlu0 %199 }
  0x89   : > { %v207_v18 = vmul.f32 0.03125, %v200_v17  ;;  %v209_v20 = vmul.f32 0.03125, %v204_v16 }
  0x8b   : > { %v211_v19 = vadd.f32 1e-08, %v207_v18  ;;  %v213_v28 = vadd.f32 1e-08, %v209_v20 }
  0x8d   : > { %1554 = vrsqrt.f32 %v211_v19  ;;  %vm221_vm1 = vweird.f32 %v211_v19  ;;  %vm241_vm8 = vweird.f32 %v213_v28 }
  0x90   : > { %v206_v21 = vpop.xlane.xlu1 %205  ;;  %v202_v22 = vpop.xlane.xlu0 %201 }
  0x91   : > { %v210_v23 = vmul.f32 0.03125, %v206_v21  ;;  %v208_v24 = vmul.f32 0.03125, %v202_v22 }
  0x93   : > { %v214_v25 = vadd.f32 1e-08, %v210_v23  ;;  %v212_v26 = vadd.f32 1e-08, %v208_v24  ;;  %v1555_v27 = vpop.eup %1554 }
  0x94   : > { %v216_v29 = vmul.f32 %v1555_v27, %v211_v19  ;;  %vm222_vm0 = vweird.f32 %v1555_v27 }
  0x95   : > { %1556 = vrsqrt.f32 %v214_v25  ;;  %vm223_vm3 = vmor %vm221_vm1, %vm222_vm0  ;;  %vm231_vm4 = vweird.f32 %v212_v26  ;;  %vm251_vm6 = vweird.f32 %v214_v25 }
  0x96   : > { %1558 = vrsqrt.f32 %v212_v26  ;;  %v217_v30 = vmul.f32 %v1555_v27, %v216_v29 }
  0x97   : > { %1560 = vrsqrt.f32 %v213_v28 }
  0x98   : > { %v218_v31 = vmul.f32 0.5, %v217_v30 }
  0x9a   : > { %v219_v35 = vsub.f32 1.5, %v218_v31 }
  0x9b   : > { %v1557_v32 = vpop.eup %1556 }
  0x9c   : > { %v1559_v33 = vpop.eup %1558  ;;  %v246_v39 = vmul.f32 %v1557_v32, %v214_v25  ;;  %v220_v43 = vmul.f32 %v1555_v27, %v219_v35  ;;  %vm252_vm7 = vweird.f32 %v1557_v32  ;;  %v1478_v35 = vld [vmem:[#allocation2 + $0x88] sm:$0xff] }
  0x9d   : > { %v226_v36 = vmul.f32 %v1559_v33, %v212_v26  ;;  %v1561_v37 = vpop.eup %1560  ;;  %vm232_vm2 = vweird.f32 %v1559_v33  ;;  %vm253_vm10 = vmor %vm251_vm6, %vm252_vm7 }
  0x9e   : > { %v236_v41 = vmul.f32 %v1561_v37, %v213_v28  ;;  %v247_v45 = vmul.f32 %v1557_v32, %v246_v39  ;;  %v224_v48 = vsel %vm223_vm3, %v1555_v27, %v220_v43  ;;  %vm233_vm5 = vmor %vm231_vm4, %vm232_vm2  ;;  %vm242_vm9 = vweird.f32 %v1561_v37  ;;  %v1547_v39 = vld [vmem:[%s1700_s2 + $0x1] ss:$0 sm:$0xff] }
  0x9f   : > { %v227_v40 = vmul.f32 %v1559_v33, %v226_v36  ;;  %v255_v52 = vmul.f32 %v224_v48, %v1648_v1  ;;  %vm243_vm11 = vmor %vm241_vm8, %vm242_vm9  ;;  %v1477_v36 = vld [vmem:[#allocation2 + $0x80] sm:$0xff] }
  0xa0   : > { %v237_v47 = vmul.f32 %v1561_v37, %v236_v41  ;;  %v248_v50 = vmul.f32 0.5, %v247_v45  ;;  %v1491_v41 = vld [vmem:[#allocation2 + $0xf0] sm:$0xff]  ;;  %v1490_v45 = vld [vmem:[#allocation2 + $0xe8] sm:$0xff] }
  0xa1   : > { %v228_v42 = vmul.f32 0.5, %v227_v40  ;;  %v1492_v40 = vld [vmem:[#allocation2 + $0xf8] sm:$0xff] }
  0xa2   : > { %v238_v54 = vmul.f32 0.5, %v237_v47  ;;  %v249_v56 = vsub.f32 1.5, %v248_v50  ;;  %645 = vmatpush.bf16.msra.mxu3 %v1492_v40 }
  0xa3   : > { %v229_v46 = vsub.f32 1.5, %v228_v42 }
  0xa4   : > { %v239_v57 = vsub.f32 1.5, %v238_v54  ;;  %v250_v58 = vmul.f32 %v1557_v32, %v249_v56 }
  0xa5   : > { %v230_v49 = vmul.f32 %v1559_v33, %v229_v46 }
  0xa6   : > { %v240_v59 = vmul.f32 %v1561_v37, %v239_v57  ;;  %v254_v60 = vsel %vm253_vm10, %v1557_v32, %v250_v58  ;;  %v1481_v32 = vld [vmem:[#allocation2 + $0xa0] sm:$0xff]  ;;  %646 = vmatpush.bf16.msra.mxu3 %v1491_v41 }
  0xa7   : > { %v234_v51 = vsel %vm233_vm5, %v1559_v33, %v230_v49  ;;  %v258_v62 = vmul.f32 %v254_v60, %v1654_v4  ;;  %v1546_v4 = vld [vmem:[%s1700_s2] ss:$0 sm:$0xff]  ;;  %v1480_v33 = vld [vmem:[#allocation2 + $0x98] sm:$0xff] }
  0xa8   : > { %v256_v53 = vmul.f32 %v234_v51, %v1656_v5  ;;  %v244_v61 = vsel %vm243_vm11, %v1561_v37, %v240_v59  ;;  %v1471_v5 = vld [vmem:[#allocation2 + $0x50] sm:$0xff] }
  0xa9   : > { %v257_v63 = vmul.f32 %v244_v61, %v1646_v0  ;;  %436 = vmatpush.bf16.msra.mxu1 %v1471_v5  ;;  %v1483_v0 = vld [vmem:[#allocation2 + $0xb0] sm:$0xff]  ;;  %v1485_v5 = vld [vmem:[#allocation2 + $0xc0] sm:$0xff] }
  0xaa   : > { %v259_v55 = vpack.c.bf16 %v256_v53, %v255_v52  ;;  %539 = vmatpush.bf16.msra.mxu2 %v1483_v0  ;;  %647 = vmatpush.bf16.msra.mxu3 %v1490_v45 }
  0xab   : > { %v260_v1 = vpack.c.bf16 %v258_v62, %v257_v63  ;;  %v1489_v63 = vld [vmem:[#allocation2 + $0xe0] sm:$0xff] }
  0xac   : > { %333 = vmatmul.bf16.vlgmr.msra.gmra.mxu0 %v259_v55 }
  0xad   : > { %437 = vmatpush.bf16.msra.mxu1 %v1470_v6 }
  0xae   : > { %540 = vmatpush.bf16.msra.mxu2 %v1482_v14  ;;  %648 = vmatpush.bf16.msra.mxu3 %v1489_v63  ;;  %v1503_v63 = vld [vmem:[#allocation2 + $0x150] sm:$0xff] }
  0xb1   : > { %438 = vmatpush.bf16.msra.mxu1 %v1469_v7 }
  0xb2   : > { %541 = vmatpush.bf16.msra.mxu2 %v1481_v32  ;;  %v1495_v32 = vld [vmem:[#allocation2 + $0x110] sm:$0xff] }
  0xb6   : > { %542 = vmatpush.bf16.msra.mxu2 %v1480_v33  ;;  %v1494_v33 = vld [vmem:[#allocation2 + $0x108] sm:$0xff] }
  0xba   : > { %543 = vmatpush.bf16.msra.mxu2 %v1479_v34  ;;  %v1493_v34 = vld [vmem:[#allocation2 + $0x100] sm:$0xff] }
  0xbc   : > { %338 = vmatmul.bf16.gmra.mxu0 %v260_v1  ;;  %v1488_v1 = vld [vmem:[#allocation2 + $0xd8] sm:$0xff] }
  0xbd   : > { %649 = vmatpush.bf16.msra.mxu3 %v1488_v1  ;;  %v1502_v1 = vld [vmem:[#allocation2 + $0x148] sm:$0xff] }
  0xbe   : > { %544 = vmatpush.bf16.msra.mxu2 %v1478_v35 }
  0xc1   : > { %650 = vmatpush.bf16.msra.mxu3 %v1487_v2  ;;  %v1501_v2 = vld [vmem:[#allocation2 + $0x140] sm:$0xff] }
  0xc2   : > { %545 = vmatpush.bf16.msra.mxu2 %v1477_v36 }
  0xc5   : > { %651 = vmatpush.bf16.msra.mxu3 %v1486_v3 }
  0xc9   : > { %652 = vmatpush.bf16.msra.mxu3 %v1485_v5 }
 0x129   : > { %v334_v8 = vpop.f32.mrf.mxu0 }
 0x12a   : > { %v344_v9 = vmul.f32 0.0025, %v334_v8  ;;  %v1548_v8 = vld [vmem:[%s1700_s2 + $0x2] ss:$0 sm:$0xff] }
 0x12c   : > { %v352_v11 = vadd.f32 %v1546_v4, %v344_v9  ;;  %v1500_v9 = vld [vmem:[#allocation2 + $0x138] sm:$0xff] }
 0x12d   : > { %752 = vmatpush.bf16.msrb.mxu0 %v1500_v9 }
 0x12e   : > { %v356_v15 = vmul.f32 0.2, %v352_v11 }
 0x130   : > { %v360_v18 = vmax.f32 %v352_v11, %v356_v15 }
 0x131   : > { %v336_v12 = vpop.f32.mrf.mxu0 }
 0x132   : > { %v345_v13 = vmul.f32 0.0025, %v336_v12  ;;  %v1498_v12 = vld [vmem:[#allocation2 + $0x128] sm:$0xff] }
 0x134   : > { %v353_v16 = vadd.f32 %v1546_v4, %v345_v13 }
 0x136   : > { %v357_v17 = vmul.f32 0.2, %v353_v16 }
 0x138   : > { %v361_v19 = vmax.f32 %v353_v16, %v357_v17  ;;  %v1497_v16 = vld [vmem:[#allocation2 + $0x120] sm:$0xff] }
 0x139   : > { %v339_v20 = vpop.f32.mrf.mxu0 }
 0x13a   : > { %v364_v21 = vpack.c.bf16 %v361_v19, %v360_v18  ;;  %v346_v22 = vmul.f32 0.0025, %v339_v20 }
 0x13c   : > { %439 = vmatmul.bf16.vlgmr.msra.gmra.mxu1 %v364_v21  ;;  %v354_v23 = vadd.f32 %v1546_v4, %v346_v22 }
 0x13e   : > { %v358_v26 = vmul.f32 0.2, %v354_v23 }
 0x140   : > { %v362_v29 = vmax.f32 %v354_v23, %v358_v26 }
 0x141   : > { %v341_v24 = vpop.f32.mrf.mxu0 }
 0x142   : > { %v347_v25 = vmul.f32 0.0025, %v341_v24 }
 0x144   : > { %v355_v27 = vadd.f32 %v1546_v4, %v347_v25  ;;  %v1499_v4 = vld [vmem:[#allocation2 + $0x130] sm:$0xff] }
 0x145   : > { %753 = vmatpush.bf16.msrb.mxu0 %v1499_v4 }
 0x146   : > { %v359_v28 = vmul.f32 0.2, %v355_v27 }
 0x148   : > { %v363_v30 = vmax.f32 %v355_v27, %v359_v28 }
 0x149   : > { %754 = vmatpush.bf16.msrb.mxu0 %v1498_v12 }
 0x14a   : > { %v365_v31 = vpack.c.bf16 %v363_v30, %v362_v29 }
 0x14c   : > { %444 = vmatmul.bf16.gmra.mxu1 %v365_v31  ;;  %v1496_v31 = vld [vmem:[#allocation2 + $0x118] sm:$0xff] }
 0x14d   : > { %755 = vmatpush.bf16.msrb.mxu0 %v1497_v16 }
 0x151   : > { %756 = vmatpush.bf16.msrb.mxu0 %v1496_v31  ;;  %v1510_v31 = vld [vmem:[#allocation2 + $0x188] sm:$0xff] }
 0x155   : > { %757 = vmatpush.bf16.msrb.mxu0 %v1495_v32  ;;  %v1509_v32 = vld [vmem:[#allocation2 + $0x180] sm:$0xff] }
 0x159   : > { %758 = vmatpush.bf16.msrb.mxu0 %v1494_v33 }
 0x15d   : > { %759 = vmatpush.bf16.msrb.mxu0 %v1493_v34 }
 0x1b9   : > { %v440_v37 = vpop.f32.mrf.mxu1 }
 0x1ba   : > { %v450_v38 = vmul.f32 0.0025, %v440_v37  ;;  %v1549_v37 = vld [vmem:[%s1700_s2 + $0x3] ss:$0 sm:$0xff] }
 0x1bc   : > { %v459_v42 = vadd.f32 %v1547_v39, %v450_v38  ;;  %v1508_v38 = vld [vmem:[#allocation2 + $0x178] sm:$0xff] }
 0x1bd   : > { %859 = vmatpush.bf16.msrb.mxu1 %v1508_v38 }
 0x1be   : > { %v463_v46 = vmul.f32 0.2, %v459_v42 }
 0x1c0   : > { %v467_v49 = vmax.f32 %v459_v42, %v463_v46 }
 0x1c1   : > { %v442_v43 = vpop.f32.mrf.mxu1 }
 0x1c2   : > { %v451_v44 = vmul.f32 0.0025, %v442_v43  ;;  %v1506_v43 = vld [vmem:[#allocation2 + $0x168] sm:$0xff] }
 0x1c4   : > { %v460_v47 = vadd.f32 %v1547_v39, %v451_v44 }
 0x1c6   : > { %v464_v48 = vmul.f32 0.2, %v460_v47 }
 0x1c8   : > { %v468_v50 = vmax.f32 %v460_v47, %v464_v48  ;;  %v1505_v47 = vld [vmem:[#allocation2 + $0x160] sm:$0xff] }
 0x1c9   : > { %v445_v51 = vpop.f32.mrf.mxu1 }
 0x1ca   : > { %v471_v52 = vpack.c.bf16 %v468_v50, %v467_v49  ;;  %v452_v53 = vmul.f32 0.0025, %v445_v51 }
 0x1cc   : > { %546 = vmatmul.bf16.vlgmr.msra.gmra.mxu2 %v471_v52  ;;  %v461_v54 = vadd.f32 %v1547_v39, %v452_v53 }
 0x1ce   : > { %v465_v57 = vmul.f32 0.2, %v461_v54 }
 0x1d0   : > { %v469_v60 = vmax.f32 %v461_v54, %v465_v57 }
 0x1d1   : > { %v447_v55 = vpop.f32.mrf.mxu1 }
 0x1d2   : > { %v453_v56 = vmul.f32 0.0025, %v447_v55 }
 0x1d4   : > { %v462_v58 = vadd.f32 %v1547_v39, %v453_v56  ;;  %v1507_v39 = vld [vmem:[#allocation2 + $0x170] sm:$0xff] }
 0x1d5   : > { %860 = vmatpush.bf16.msrb.mxu1 %v1507_v39 }
 0x1d6   : > { %v466_v59 = vmul.f32 0.2, %v462_v58 }
 0x1d8   : > { %v470_v61 = vmax.f32 %v462_v58, %v466_v59 }
 0x1d9   : > { %861 = vmatpush.bf16.msrb.mxu1 %v1506_v43 }
 0x1da   : > { %v472_v62 = vpack.c.bf16 %v470_v61, %v469_v60 }
 0x1dc   : > { %551 = vmatmul.bf16.gmra.mxu2 %v472_v62  ;;  %v1504_v62 = vld [vmem:[#allocation2 + $0x158] sm:$0xff] }
 0x1dd   : > { %862 = vmatpush.bf16.msrb.mxu1 %v1505_v47 }
 0x1e1   : > { %863 = vmatpush.bf16.msrb.mxu1 %v1504_v62  ;;  %v1518_v62 = vld [vmem:[#allocation2 + $0x1c8] sm:$0xff] }
 0x1e5   : > { %864 = vmatpush.bf16.msrb.mxu1 %v1503_v63  ;;  %v1517_v63 = vld [vmem:[#allocation2 + $0x1c0] sm:$0xff] }
 0x1e9   : > { %865 = vmatpush.bf16.msrb.mxu1 %v1502_v1 }
 0x1ed   : > { %866 = vmatpush.bf16.msrb.mxu1 %v1501_v2 }
 0x24f   : > { %v547_v6 = vpop.f32.mrf.mxu2 }
 0x250   : > { %v557_v7 = vmul.f32 0.0025, %v547_v6  ;;  %v1550_v6 = vld [vmem:[%s1700_s2 + $0x4] ss:$0 sm:$0xff] }
 0x252   : > { %v566_v10 = vadd.f32 %v1548_v8, %v557_v7  ;;  %v1516_v7 = vld [vmem:[#allocation2 + $0x1b8] sm:$0xff] }
 0x253   : > { %966 = vmatpush.bf16.msrb.mxu2 %v1516_v7 }
 0x254   : > { %v570_v13 = vmul.f32 0.2, %v566_v10 }
 0x256   : > { %v574_v17 = vmax.f32 %v566_v10, %v570_v13 }
 0x257   : > { %v549_v0 = vpop.f32.mrf.mxu2 }
 0x258   : > { %v558_v11 = vmul.f32 0.0025, %v549_v0  ;;  %v1514_v0 = vld [vmem:[#allocation2 + $0x1a8] sm:$0xff] }
 0x25a   : > { %v567_v14 = vadd.f32 %v1548_v8, %v558_v11 }
 0x25c   : > { %v571_v15 = vmul.f32 0.2, %v567_v14 }
 0x25e   : > { %v575_v18 = vmax.f32 %v567_v14, %v571_v15  ;;  %v1513_v14 = vld [vmem:[#allocation2 + $0x1a0] sm:$0xff] }
 0x25f   : > { %v552_v19 = vpop.f32.mrf.mxu2 }
 0x260   : > { %v578_v20 = vpack.c.bf16 %v575_v18, %v574_v17  ;;  %v559_v21 = vmul.f32 0.0025, %v552_v19 }
 0x262   : > { %653 = vmatmul.bf16.vlgmr.msra.gmra.mxu3 %v578_v20  ;;  %v568_v22 = vadd.f32 %v1548_v8, %v559_v21 }
 0x264   : > { %v572_v25 = vmul.f32 0.2, %v568_v22 }
 0x266   : > { %v576_v28 = vmax.f32 %v568_v22, %v572_v25 }
 0x267   : > { %v554_v23 = vpop.f32.mrf.mxu2 }
 0x268   : > { %v560_v24 = vmul.f32 0.0025, %v554_v23 }
 0x26a   : > { %v569_v26 = vadd.f32 %v1548_v8, %v560_v24  ;;  %v1515_v8 = vld [vmem:[#allocation2 + $0x1b0] sm:$0xff] }
 0x26b   : > { %967 = vmatpush.bf16.msrb.mxu2 %v1515_v8 }
 0x26c   : > { %v573_v27 = vmul.f32 0.2, %v569_v26 }
 0x26e   : > { %v577_v29 = vmax.f32 %v569_v26, %v573_v27 }
 0x26f   : > { %968 = vmatpush.bf16.msrb.mxu2 %v1514_v0 }
 0x270   : > { %v579_v30 = vpack.c.bf16 %v577_v29, %v576_v28  ;;  %v1512_v29 = vld [vmem:[#allocation2 + $0x198] sm:$0xff] }
 0x272   : > { %658 = vmatmul.bf16.gmra.mxu3 %v579_v30  ;;  %v1511_v30 = vld [vmem:[#allocation2 + $0x190] sm:$0xff] }
 0x273   : > { %969 = vmatpush.bf16.msrb.mxu2 %v1513_v14 }
 0x277   : > { %970 = vmatpush.bf16.msrb.mxu2 %v1512_v29 }
 0x27b   : > { %971 = vmatpush.bf16.msrb.mxu2 %v1511_v30 }
 0x27f   : > { %972 = vmatpush.bf16.msrb.mxu2 %v1510_v31 }
 0x283   : > { %973 = vmatpush.bf16.msrb.mxu2 %v1509_v32 }
 0x2e5   : > { %v654_v35 = vpop.f32.mrf.mxu3 }
 0x2e6   : > { %v664_v36 = vmul.f32 0.0025, %v654_v35  ;;  %v1551_v35 = vld [vmem:[%s1700_s2 + $0x5] ss:$0 sm:$0xff] }
 0x2e8   : > { %v673_v40 = vadd.f32 %v1549_v37, %v664_v36  ;;  %v1524_v36 = vld [vmem:[#allocation2 + $0x1f8] sm:$0xff] }
 0x2e9   : > { %1073 = vmatpush.bf16.msrb.mxu3 %v1524_v36 }
 0x2ea   : > { %v677_v44 = vmul.f32 0.2, %v673_v40 }
 0x2ec   : > { %v681_v48 = vmax.f32 %v673_v40, %v677_v44 }
 0x2ed   : > { %v656_v41 = vpop.f32.mrf.mxu3 }
 0x2ee   : > { %v665_v42 = vmul.f32 0.0025, %v656_v41  ;;  %v1522_v41 = vld [vmem:[#allocation2 + $0x1e8] sm:$0xff] }
 0x2f0   : > { %v674_v45 = vadd.f32 %v1549_v37, %v665_v42 }
 0x2f2   : > { %v678_v46 = vmul.f32 0.2, %v674_v45 }
 0x2f4   : > { %v682_v49 = vmax.f32 %v674_v45, %v678_v46  ;;  %v1521_v45 = vld [vmem:[#allocation2 + $0x1e0] sm:$0xff] }
 0x2f5   : > { %v659_v50 = vpop.f32.mrf.mxu3 }
 0x2f6   : > { %v685_v51 = vpack.c.bf16 %v682_v49, %v681_v48  ;;  %v666_v52 = vmul.f32 0.0025, %v659_v50 }
 0x2f8   : > { %760 = vmatmul.bf16.vlgmr.msrb.gmra.mxu0 %v685_v51  ;;  %v675_v53 = vadd.f32 %v1549_v37, %v666_v52 }
 0x2fa   : > { %v679_v56 = vmul.f32 0.2, %v675_v53 }
 0x2fc   : > { %v683_v59 = vmax.f32 %v675_v53, %v679_v56 }
 0x2fd   : > { %v661_v54 = vpop.f32.mrf.mxu3 }
 0x2fe   : > { %v667_v55 = vmul.f32 0.0025, %v661_v54 }
 0x300   : > { %v676_v57 = vadd.f32 %v1549_v37, %v667_v55  ;;  %v1523_v37 = vld [vmem:[#allocation2 + $0x1f0] sm:$0xff] }
 0x301   : > { %1074 = vmatpush.bf16.msrb.mxu3 %v1523_v37 }
 0x302   : > { %v680_v58 = vmul.f32 0.2, %v676_v57 }
 0x304   : > { %v684_v60 = vmax.f32 %v676_v57, %v680_v58 }
 0x305   : > { %1075 = vmatpush.bf16.msrb.mxu3 %v1522_v41 }
 0x306   : > { %v686_v61 = vpack.c.bf16 %v684_v60, %v683_v59  ;;  %v1520_v60 = vld [vmem:[#allocation2 + $0x1d8] sm:$0xff] }
 0x308   : > { %765 = vmatmul.bf16.gmra.mxu0 %v686_v61  ;;  %v1519_v61 = vld [vmem:[#allocation2 + $0x1d0] sm:$0xff] }
 0x309   : > { %1076 = vmatpush.bf16.msrb.mxu3 %v1521_v45 }
 0x30d   : > { %1077 = vmatpush.bf16.msrb.mxu3 %v1520_v60 }
 0x311   : > { %1078 = vmatpush.bf16.msrb.mxu3 %v1519_v61 }
 0x315   : > { %1079 = vmatpush.bf16.msrb.mxu3 %v1518_v62 }
 0x319   : > { %1080 = vmatpush.bf16.msrb.mxu3 %v1517_v63 }
 0x375   : > { %v761_v3 = vpop.f32.mrf.mxu0 }
 0x376   : > { %v771_v5 = vmul.f32 0.0025, %v761_v3  ;;  %v1552_v3 = vld [vmem:[%s1700_s2 + $0x6] ss:$0 sm:$0xff] }
 0x378   : > { %v780_v9 = vadd.f32 %v1550_v6, %v771_v5 }
 0x37a   : > { %v784_v11 = vmul.f32 0.2, %v780_v9 }
 0x37c   : > { %v788_v15 = vmax.f32 %v780_v9, %v784_v11 }
 0x37d   : > { %v763_v4 = vpop.f32.mrf.mxu0 }
 0x37e   : > { %v772_v10 = vmul.f32 0.0025, %v763_v4 }
 0x380   : > { %v781_v12 = vadd.f32 %v1550_v6, %v772_v10 }
 0x382   : > { %v785_v13 = vmul.f32 0.2, %v781_v12 }
 0x384   : > { %v789_v16 = vmax.f32 %v781_v12, %v785_v13 }
 0x385   : > { %v766_v17 = vpop.f32.mrf.mxu0 }
 0x386   : > { %v792_v18 = vpack.c.bf16 %v789_v16, %v788_v15  ;;  %v773_v19 = vmul.f32 0.0025, %v766_v17 }
 0x388   : > { %867 = vmatmul.bf16.vlgmr.msrb.gmra.mxu1 %v792_v18  ;;  %v782_v20 = vadd.f32 %v1550_v6, %v773_v19 }
 0x38a   : > { %v786_v23 = vmul.f32 0.2, %v782_v20 }
 0x38c   : > { %v790_v26 = vmax.f32 %v782_v20, %v786_v23  ;;  %v1553_v23 = vld [vmem:[%s1700_s2 + $0x7] ss:$0 sm:$0xff] }
 0x38d   : > { %v768_v21 = vpop.f32.mrf.mxu0 }
 0x38e   : > { %v774_v22 = vmul.f32 0.0025, %v768_v21 }
 0x390   : > { %v783_v24 = vadd.f32 %v1550_v6, %v774_v22 }
 0x392   : > { %v787_v25 = vmul.f32 0.2, %v783_v24 }
 0x394   : > { %v791_v27 = vmax.f32 %v783_v24, %v787_v25 }
 0x396   : > { %v793_v28 = vpack.c.bf16 %v791_v27, %v790_v26 }
 0x398   : > { %872 = vmatmul.bf16.gmra.mxu1 %v793_v28 }
 0x405   : > { %v868_v33 = vpop.f32.mrf.mxu1 }
 0x406   : > { %v878_v34 = vmul.f32 0.0025, %v868_v33 }
 0x408   : > { %v887_v38 = vadd.f32 %v1551_v35, %v878_v34 }
 0x40a   : > { %v891_v42 = vmul.f32 0.2, %v887_v38 }
 0x40c   : > { %v895_v46 = vmax.f32 %v887_v38, %v891_v42 }
 0x40d   : > { %v870_v39 = vpop.f32.mrf.mxu1 }
 0x40e   : > { %v879_v40 = vmul.f32 0.0025, %v870_v39 }
 0x410   : > { %v888_v43 = vadd.f32 %v1551_v35, %v879_v40 }
 0x412   : > { %v892_v44 = vmul.f32 0.2, %v888_v43 }
 0x414   : > { %v896_v47 = vmax.f32 %v888_v43, %v892_v44 }
 0x415   : > { %v873_v48 = vpop.f32.mrf.mxu1 }
 0x416   : > { %v899_v49 = vpack.c.bf16 %v896_v47, %v895_v46  ;;  %v880_v50 = vmul.f32 0.0025, %v873_v48 }
 0x418   : > { %974 = vmatmul.bf16.vlgmr.msrb.gmra.mxu2 %v899_v49  ;;  %v889_v51 = vadd.f32 %v1551_v35, %v880_v50 }
 0x41a   : > { %v893_v54 = vmul.f32 0.2, %v889_v51 }
 0x41c   : > { %v897_v57 = vmax.f32 %v889_v51, %v893_v54 }
 0x41d   : > { %v875_v52 = vpop.f32.mrf.mxu1 }
 0x41e   : > { %v881_v53 = vmul.f32 0.0025, %v875_v52 }
 0x420   : > { %v890_v55 = vadd.f32 %v1551_v35, %v881_v53 }
 0x422   : > { %v894_v56 = vmul.f32 0.2, %v890_v55 }
 0x424   : > { %v898_v58 = vmax.f32 %v890_v55, %v894_v56 }
 0x426   : > { %v900_v59 = vpack.c.bf16 %v898_v58, %v897_v57 }
 0x428   : > { %979 = vmatmul.bf16.gmra.mxu2 %v900_v59 }
 0x49b   : > { %v975_v1 = vpop.f32.mrf.mxu2 }
 0x49c   : > { %v985_v2 = vmul.f32 0.0025, %v975_v1 }
 0x49e   : > { %v994_v5 = vadd.f32 %v1552_v3, %v985_v2 }
 0x4a0   : > { %v998_v8 = vmul.f32 0.2, %v994_v5 }
 0x4a2   : > { %v1002_v10 = vmax.f32 %v994_v5, %v998_v8 }
 0x4a3   : > { %v977_v6 = vpop.f32.mrf.mxu2 }
 0x4a4   : > { %v986_v7 = vmul.f32 0.0025, %v977_v6 }
 0x4a6   : > { %v995_v9 = vadd.f32 %v1552_v3, %v986_v7 }
 0x4a8   : > { %v999_v4 = vmul.f32 0.2, %v995_v9 }
 0x4aa   : > { %v1003_v0 = vmax.f32 %v995_v9, %v999_v4 }
 0x4ab   : > { %v980_v11 = vpop.f32.mrf.mxu2 }
 0x4ac   : > { %v1006_v12 = vpack.c.bf16 %v1003_v0, %v1002_v10  ;;  %v987_v13 = vmul.f32 0.0025, %v980_v11 }
 0x4ae   : > { %1081 = vmatmul.bf16.vlgmr.msrb.gmra.mxu3 %v1006_v12  ;;  %v996_v14 = vadd.f32 %v1552_v3, %v987_v13 }
 0x4b0   : > { %v1000_v17 = vmul.f32 0.2, %v996_v14 }
 0x4b2   : > { %v1004_v20 = vmax.f32 %v996_v14, %v1000_v17 }
 0x4b3   : > { %v982_v15 = vpop.f32.mrf.mxu2 }
 0x4b4   : > { %v988_v16 = vmul.f32 0.0025, %v982_v15 }
 0x4b6   : > { %v997_v18 = vadd.f32 %v1552_v3, %v988_v16 }
 0x4b8   : > { %v1001_v19 = vmul.f32 0.2, %v997_v18 }
 0x4ba   : > { %v1005_v21 = vmax.f32 %v997_v18, %v1001_v19 }
 0x4bc   : > { %v1007_v22 = vpack.c.bf16 %v1005_v21, %v1004_v20 }
 0x4be   : > { %1086 = vmatmul.bf16.gmra.mxu3 %v1007_v22 }
 0x531   : > { %v1082_v24 = vpop.f32.mrf.mxu3 }
 0x532   : > { %v1092_v25 = vmul.f32 0.0025, %v1082_v24 }
 0x534   : > { %v1101_v26 = vadd.f32 %v1553_v23, %v1092_v25 }
 0x536   : > { %v1105_v27 = vmul.f32 0.2, %v1101_v26 }
 0x538   : > { %v1109_v28 = vmax.f32 %v1101_v26, %v1105_v27 }
 0x539   : > { %v1084_v29 = vpop.f32.mrf.mxu3 }
 0x53a   : > { %1113 = vst [vmem:[%s189_s18] sm:$0xff] %v1109_v28  ;;  %v1093_v30 = vmul.f32 0.0025, %v1084_v29 }
 0x53c   : > { %v1102_v31 = vadd.f32 %v1553_v23, %v1093_v30 }
 0x53e   : > { %v1106_v32 = vmul.f32 0.2, %v1102_v31 }
 0x540   : > { %v1110_v33 = vmax.f32 %v1102_v31, %v1106_v32 }
 0x541   : > { %v1087_v34 = vpop.f32.mrf.mxu3 }
 0x542   : > { %1114 = vst [vmem:[%s189_s18 + $0x8] sm:$0xff] %v1110_v33  ;;  %v1094_v35 = vmul.f32 0.0025, %v1087_v34 }
 0x544   : > { %v1103_v36 = vadd.f32 %v1553_v23, %v1094_v35 }
 0x546   : > { %v1107_v37 = vmul.f32 0.2, %v1103_v36 }
 0x548   : > { %v1111_v38 = vmax.f32 %v1103_v36, %v1107_v37 }
 0x549   : > { %v1089_v39 = vpop.f32.mrf.mxu3 }
 0x54a   : > { %1115 = vst [vmem:[%s189_s18 + $0x10] sm:$0xff] %v1111_v38  ;;  %v1095_v40 = vmul.f32 0.0025, %v1089_v39 }
 0x54c   : > { %v1104_v41 = vadd.f32 %v1553_v23, %v1095_v40 }
 0x54e   : > { %v1108_v42 = vmul.f32 0.2, %v1104_v41 }
 0x550   : > { %v1112_v43 = vmax.f32 %v1104_v41, %v1108_v42 }
 0x552   : > { %1116 = vst [vmem:[%s189_s18 + $0x18] sm:$0xff] %v1112_v43 }
 0x553 PF: > { %s14_s12 = sadd.s32 1, %s1602_s12  }
 0x554   : > { %p11_p7 = scmp.ge.s32.totalorder %s14_s12, 4  }
 0x556   :  { %13 = sbr.rel (!%p11_p7) target bundleno = 1 (0x1), region = 81 }
 0x55b   :  { %1139 = vsyncpa [#allocation3], 1 }
 0x55c   :  { %1141 = vsyncpa [#allocation3 + $0x1], 1 }

</bundles_post_ra>
